<compile_context>
chip_gen: v7x
topology: tpu7x:2x2x1
jax: 0.10.0
libtpu: 0.0.40
codegen_flags: <defaults>
</compile_context>

<pallas_src>
import jax
import jax.numpy as jnp
from jax import lax
from jax.experimental import pallas as pl
from jax.experimental.pallas import tpu as pltpu


def _round_up(x: int, m: int) -> int:
    return ((x + m - 1) // m) * m


# ----------------------------- kernels --------------------------------------


def _dyn_translation_kernel(emb_ref, idx_ref, trans_ref, out_ref):
    # emb_ref:   (TM, Dp) f32 -- tile of input vectors
    # idx_ref:   (TM, 1)  i32 -- per-row operator index for this tile
    # trans_ref: (NOPp, Dp) f32 -- full operator-parameter table, VMEM resident
    # out_ref:   (TM, Dp) f32
    tm = emb_ref.shape[0]
    nop = trans_ref.shape[0]
    # One-hot gather on the MXU: (TM, NOPp) @ (NOPp, Dp). Rides the otherwise
    # idle matmul slot; the VPU add + single full-tile store is the only
    # remaining vector work (keeps the single vst slot on v5e happy).
    onehot = (idx_ref[...] ==
              lax.broadcasted_iota(jnp.int32, (tm, nop), 1)).astype(jnp.float32)
    gathered = jnp.dot(onehot, trans_ref[...].astype(jnp.float32),
                       preferred_element_type=jnp.float32)
    out_ref[...] = (emb_ref[...].astype(jnp.float32) + gathered).astype(out_ref.dtype)


def _abs_kernel(x_ref, o_ref):
    o_ref[...] = jnp.abs(x_ref[...])


# ----------------------------- wrappers -------------------------------------


def dynamic_translation_forward(embeddings, operator_idxs, translations,
                                tm_target: int = 512):
    """out[..., :] = embeddings[..., :] + translations[operator_idxs[...], :].

    embeddings:     float32, shape (..., dim)
    operator_idxs:  int,     shape (...)        (same leading dims as embeddings)
    translations:   float32, shape (num_operations, dim)
    """
    lead_shape = embeddings.shape[:-1]
    dim = embeddings.shape[-1]
    num_ops = translations.shape[0]

    emb2d = embeddings.reshape(-1, dim)
    idx2d = operator_idxs.reshape(-1, 1).astype(jnp.int32)
    n_rows = emb2d.shape[0]

    # Padded sizes: rows to a multiple of TM (>=8), dim to a lane-dense
    # multiple of 128, table rows to a multiple of 8.
    tm = min(tm_target, _round_up(n_rows, 8))
    rows_p = _round_up(n_rows, tm)
    d_p = _round_up(dim, 128)
    nop_p = _round_up(num_ops, 8)

    if rows_p != n_rows or d_p != dim:
        emb2d = jnp.pad(emb2d, ((0, rows_p - n_rows), (0, d_p - dim)))
    if rows_p != n_rows:
        idx2d = jnp.pad(idx2d, ((0, rows_p - n_rows), (0, 0)))  # pads with idx 0 (valid)
    if nop_p != num_ops or d_p != dim:
        trans_p = jnp.pad(translations, ((0, nop_p - num_ops), (0, d_p - dim)))
    else:
        trans_p = translations

    grid = (rows_p // tm,)

    cost = pl.CostEstimate(
        flops=2 * rows_p * d_p,
        transcendentals=0,
        bytes_accessed=(3 * rows_p * d_p + nop_p * d_p) * 4 + rows_p * 4,
    )

    out_p = pl.pallas_call(
        _dyn_translation_kernel,
        out_shape=jax.ShapeDtypeStruct((rows_p, d_p), embeddings.dtype),
        grid=grid,
        in_specs=[
            pl.BlockSpec((tm, d_p), lambda i: (i, 0)),     # embeddings tile
            pl.BlockSpec((tm, 1), lambda i: (i, 0)),       # per-row operator idx
            pl.BlockSpec((nop_p, d_p), lambda i: (0, 0)),  # full table, resident
        ],
        out_specs=pl.BlockSpec((tm, d_p), lambda i: (i, 0)),
        compiler_params=pltpu.CompilerParams(
            dimension_semantics=("parallel",),
        ),
        cost_estimate=cost,
    )(emb2d, idx2d, trans_p)

    out2d = out_p[:n_rows, :dim]
    return out2d.reshape(*lead_shape, dim)


def prepare_embs_for_reg(embs, tm_target: int = 512):
    """abs(embs), matching AbstractDynamicOperator.prepare_embs_for_reg."""
    lead_shape = embs.shape[:-1]
    dim = embs.shape[-1]
    x2d = embs.reshape(-1, dim)
    n_rows = x2d.shape[0]

    tm = min(tm_target, _round_up(n_rows, 8))
    rows_p = _round_up(n_rows, tm)
    d_p = _round_up(dim, 128)
    if rows_p != n_rows or d_p != dim:
        x2d = jnp.pad(x2d, ((0, rows_p - n_rows), (0, d_p - dim)))

    out_p = pl.pallas_call(
        _abs_kernel,
        out_shape=jax.ShapeDtypeStruct((rows_p, d_p), embs.dtype),
        grid=(rows_p // tm,),
        in_specs=[pl.BlockSpec((tm, d_p), lambda i: (i, 0))],
        out_specs=pl.BlockSpec((tm, d_p), lambda i: (i, 0)),
        compiler_params=pltpu.CompilerParams(
            dimension_semantics=("parallel",),
        ),
    )(x2d)
    return out_p[:n_rows, :dim].reshape(*lead_shape, dim)


# ----------------------------- main -----------------------------------------


if __name__ == "__main__":
    key = jax.random.PRNGKey(0)
    k_emb, k_trans, k_idx, k_emb2, k_idx2 = jax.random.split(key, 5)

    # Primary test: lane-dense dim (multiple of 128).
    dim = 128
    num_operations = 5
    lead = (2, 4)  # embeddings can have any number of leading dims

    embeddings = jax.random.normal(k_emb, lead + (dim,), dtype=jnp.float32)
    operator_idxs = jax.random.randint(k_idx, lead, 0, num_operations, dtype=jnp.int32)
    translations = 0.1 * jax.random.normal(
        k_trans, (num_operations, dim), dtype=jnp.float32
    )

    out = dynamic_translation_forward(embeddings, operator_idxs, translations)
    out = jax.block_until_ready(out)
    ref = embeddings + translations[operator_idxs]
    assert out.shape == embeddings.shape
    assert jnp.allclose(out, ref, atol=1e-5), "forward mismatch (dim=128)"

    # Secondary test: small dim (exercises the pad-to-128 path), 1 leading dim.
    dim2 = 32
    embeddings2 = jax.random.normal(k_emb2, (7, dim2), dtype=jnp.float32)
    operator_idxs2 = jax.random.randint(k_idx2, (7,), 0, num_operations, dtype=jnp.int32)
    translations2 = translations[:, :dim2]
    out2 = jax.block_until_ready(
        dynamic_translation_forward(embeddings2, operator_idxs2, translations2)
    )
    ref2 = embeddings2 + translations2[operator_idxs2]
    assert jnp.allclose(out2, ref2, atol=1e-5), "forward mismatch (dim=32)"

    # prepare_embs_for_reg
    reg = jax.block_until_ready(prepare_embs_for_reg(embeddings))
    assert jnp.allclose(reg, jnp.abs(embeddings), atol=1e-6), "reg mismatch"

    print("KERNEL_OK")
</pallas_src>

<mosaic_0001>
module attributes {stable_mosaic.version = 11 : i64} {
  func.func @_dyn_translation_kernel(%arg0: i32, %arg1: memref<8x128xf32, #tpu.memory_space<vmem>>, %arg2: memref<8x1xi32, #tpu.memory_space<vmem>>, %arg3: memref<8x128xf32, #tpu.memory_space<vmem>>, %arg4: memref<8x128xf32, #tpu.memory_space<vmem>>) attributes {dimension_semantics = [#tpu.dimension_semantics<parallel>], iteration_bounds = array<i64: 1>, scalar_prefetch = 0 : i64, scratch_operands = 0 : i64, tpu.core_type = #tpu.core_type<tc>, window_params = [{transform_indices = @transform_0, window_bounds = array<i64: 8, 128>}, {transform_indices = @transform_1, window_bounds = array<i64: 8, 1>}, {pipeline_mode = #tpu.pipeline_mode<synchronous>, transform_indices = @transform_2, window_bounds = array<i64: 8, 128>}, {transform_indices = @transform_3, window_bounds = array<i64: 8, 128>}]} {
    %c0 = arith.constant 0 : index
    %c0_0 = arith.constant 0 : index
    %0 = vector.load %arg2[%c0, %c0_0] : memref<8x1xi32, #tpu.memory_space<vmem>>, vector<8x1xi32>
    %1 = tpu.iota {dimensions = array<i32: 1>} : vector<8x8xi32>
    %2 = vector.broadcast %0 : vector<8x1xi32> to vector<8x8xi32>
    %3 = arith.cmpi eq, %2, %1 : vector<8x8xi32>
    %4 = arith.extui %3 : vector<8x8xi1> to vector<8x8xi32>
    %5 = arith.sitofp %4 : vector<8x8xi32> to vector<8x8xf32>
    %c0_1 = arith.constant 0 : index
    %c0_2 = arith.constant 0 : index
    %6 = vector.load %arg3[%c0_1, %c0_2] : memref<8x128xf32, #tpu.memory_space<vmem>>, vector<8x128xf32>
    %cst = arith.constant dense<0.000000e+00> : vector<8x128xf32>
    %7 = tpu.matmul %5, %6, %cst {dimension_numbers = #tpu.dot_dimension_numbers<[1], [0], [0], [1], [0, 0, 1, 1], [], []>} : vector<8x8xf32>, vector<8x128xf32>, vector<8x128xf32> -> vector<8x128xf32>
    %c0_3 = arith.constant 0 : index
    %c0_4 = arith.constant 0 : index
    %8 = vector.load %arg1[%c0_3, %c0_4] : memref<8x128xf32, #tpu.memory_space<vmem>>, vector<8x128xf32>
    %9 = arith.addf %8, %7 : vector<8x128xf32>
    %c0_5 = arith.constant 0 : index
    %c0_6 = arith.constant 0 : index
    %10 = vector.load %arg4[%c0_5, %c0_6] : memref<8x128xf32, #tpu.memory_space<vmem>>, vector<8x128xf32>
    tpu.vector_store %arg4[%c0_5, %c0_6], %9 {strides = array<i32>} : memref<8x128xf32, #tpu.memory_space<vmem>>, vector<8x128xf32>,
    return
  }
  func.func @transform_0(%arg0: i32) -> (i32, i32) {
    %c0_i32 = arith.constant 0 : i32
    %c0_i32_0 = arith.constant 0 : i32
    return %arg0, %c0_i32 : i32, i32
  }
  func.func @transform_1(%arg0: i32) -> (i32, i32) {
    %c0_i32 = arith.constant 0 : i32
    %c0_i32_0 = arith.constant 0 : i32
    return %arg0, %c0_i32 : i32, i32
  }
  func.func @transform_2(%arg0: i32) -> (i32, i32) {
    %c0_i32 = arith.constant 0 : i32
    %c0_i32_0 = arith.constant 0 : i32
    %c0_i32_1 = arith.constant 0 : i32
    return %c0_i32, %c0_i32_0 : i32, i32
  }
  func.func @transform_3(%arg0: i32) -> (i32, i32) {
    %c0_i32 = arith.constant 0 : i32
    %c0_i32_0 = arith.constant 0 : i32
    return %arg0, %c0_i32 : i32, i32
  }
}

</mosaic_0001>

<bundles_post_ra>
// kernel: tpu_custom_call.1
= control target key start
LH: loop header
LB: loop body
LE: loop exit
PB: predicated region body
PF: predicated region fallthrough
CT: control target
= control target key end

     0   :  { %s199_s0 = inlined_call_operand.vmem [shape: f32[8,128], index: 0, kind: input, shape index: {}]   ;;  %s200_s1 = inlined_call_operand.vmem [shape: s32[8,1], index: 1, kind: input, shape index: {}]   ;;  %s201_s2 = inlined_call_operand.vmem [shape: f32[8,128], index: 2, kind: input, shape index: {}]   ;;  %s202_s3 = inlined_call_operand.hbm [shape: f32[8,128], index: 3, kind: output, shape index: {}]  }
   0x1   :  { %v15_v0 = vld [vmem:[%s200_s1] sm:$0xff] }
   0x2   :  { %8 = vsyncpa [#allocation3], 0  ;;  %v154_v1 = vmov 0   ;;  %v155_v2 = vmov 0.0   ;;  %v24_v3 = vld [vmem:[%s201_s2] sm:$0xff]  ;;  %vm156_vm0 = vmmov 0   ;;  %v16_v4 = vlaneseq }
   0x3   :  { %129 = vset.pattern.permute.xlu0 %v154_v1  ;;  %120 = vmatprep.subr.mxu0 %v155_v2  ;;  %vm25_vm1 = vcmask 64512   ;;  %v99_v8 = vld [vmem:[%s199_s0] sm:$0xff]  ;;  %s157_s17 = smov [#allocation2]  }
   0x4   :  { %19 = vperm.xlu0 %129, %v15_v0   ;;  %121 = vmatpush3.msra.mxu0 %v24_v3  ;;  %v17_v5 = vand.u32 127, %v16_v4  ;;  %s108_s18 = sshll.u32 %s157_s17, 4  ;;  %s109_s18 = int_to_ptr.vmem [resolvable:$true] %s108_s18 }
   0x5   :  { %122 = vmatprep.mubr.msk.f32.mxu0 %vm156_vm0, %v155_v2  ;;  %s130_s2 = scalar_lea.vmem %s109_s18, 128  ;;  %p135_p1 = scmp.lt.s32.totalorder %s109_s18, %s109_s18 }
   0x6   :  { %p131_p0 = scmp.ne.s32.totalorder %s109_s18, %s130_s2  ;;  %p136_p2 = scmp.lt.s32.totalorder %s130_s2, %s130_s2 }
   0x8   :  { %p137_p3 = por %p136_p2, %p135_p1 }
   0xa   :  { %p138_p4 = pnand %p137_p3, %p131_p0 }
  0x83   :  { %v20_v6 = vpop.permute.xlu0 %19 }
  0x84   :  { %vm21_vm2 = vcmp.eq.s32.totalorder %v20_v6, %v17_v5 }
  0x85   :  { %v116_v7 = vsel %vm21_vm2, 1.0, %v155_v2 }
  0x86   :  { %123 = vmatmul.mubr.msk.f32.vlgmr.msra.gmra.mrb[0].mxu0 %vm25_vm1, %v116_v7 }
 0x159   :  { %v95_v9 = vpop.f32.mrb[0].mxu0 }
 0x15a   :  { %v100_v10 = vadd.f32 %v99_v8, %v95_v9  ;;  %v124_v11 = vpop.f32.mrb[1].mxu0 }
 0x15c   :  { %101 = vst [vmem:[#allocation2] sm:$0xff] %v100_v10 }
 0x15d   :  { %141 = shalt.err (!%p138_p4)
}
 0x15e   :  { %s142_s21 = scalar_lea.hbm %s202_s3, 128 }
 0x15f   :  { %p143_p5 = scmp.ne.s32.totalorder %s202_s3, %s142_s21  ;;  %p146_p6 = scmp.lt.u32.totalorder %s142_s21, %s202_s3 }
 0x161   :  { %p148_p7 = pnand %p146_p6, %p143_p5 }
 0x163   :  { %151 = shalt.err (!%p148_p7)
}
 0x164   :  { %111 = dma.vmem_to_hbm [thread:$0]  %s109_s18, 128, %s202_s3, [#allocation3]  }
 0x165   :  { %152 = dma.done.wait [#allocation3], 128  }
 0x166   :  { %153 = vsyncadd [#allocation3], 4294967168 }
 0x167   :  { %115 = vsyncpa [#allocation3], 1 }

</bundles_post_ra>
